<compile_context>
chip_gen: v5e
topology: v5e:2x2
jax: 0.10.0
libtpu: 0.0.40
codegen_flags: <defaults>
</compile_context>

<pallas_src>
import jax
import jax.numpy as jnp
from jax import lax
from jax.experimental import pallas as pl
from jax.experimental.pallas import tpu as pltpu


def _round_up(v, m):
    return ((v + m - 1) // m) * m


def projector_kernel(x_ref, w1_ref, b1_ref, w2_ref, b2_ref, o_ref):
    # x_ref : (TN, Din) native dtype     w1_ref: (Din, H)  bf16 (pre-transposed)
    # b1_ref: (1, H)    f32              w2_ref: (H, Dout) bf16 (pre-transposed)
    # b2_ref: (1, Dout) f32              o_ref : (TN, Dout) out dtype (bf16 default)
    x = x_ref[...].astype(w1_ref.dtype)                 # in-kernel autocast      [VPU]

    # fc1: plain (M,K)@(K,N) contraction, f32 accumulation.                       [MXU]
    h = jnp.dot(x, w1_ref[...], preferred_element_type=jnp.float32)
    h = h + b1_ref[...]                                 # bias in f32             [VPU]
    h = h * jax.nn.sigmoid(h)                           # SiLU in f32         [VPU+EUP]

    # fc2: plain (M,K)@(K,N) contraction, f32 accumulation.                       [MXU]
    out = jnp.dot(h.astype(w2_ref.dtype), w2_ref[...],
                  preferred_element_type=jnp.float32)
    out = out + b2_ref[...]
    o_ref[...] = out.astype(o_ref.dtype)


def prepare_projector_params(w1, b1, w2, b2, compute_dtype=jnp.bfloat16):
    """One-time parameter prep (done at load time in a real model, NOT per call):
    transpose nn.Linear weights to MXU-native (K, N) layout and cast to the
    autocast compute dtype; keep biases in f32."""
    w1t = jnp.asarray(w1).T.astype(compute_dtype)            # (Din, H)
    w2t = jnp.asarray(w2).T.astype(compute_dtype)            # (H, Dout)
    b1f = jnp.asarray(b1).astype(jnp.float32).reshape(1, -1)  # (1, H)
    b2f = jnp.asarray(b2).astype(jnp.float32).reshape(1, -1)  # (1, Dout)
    return w1t, b1f, w2t, b2f


def projector_forward(x, w1t, b1f, w2t, b2f, *, block_rows=512,
                      out_dtype=jnp.bfloat16):
    """x: (..., Din);  w1t: (Din, H) bf16;  b1f: (1, H) f32;
       w2t: (H, Dout) bf16;  b2f: (1, Dout) f32.  Returns (..., Dout) out_dtype."""
    din, h_dim = w1t.shape
    h_dim2, dout = w2t.shape
    assert x.shape[-1] == din and h_dim == h_dim2, "param shapes inconsistent with x"

    lead_shape = x.shape[:-1]
    x2 = x.reshape(-1, din)
    n = x2.shape[0]
    x_itemsize = x2.dtype.itemsize
    out_itemsize = jnp.dtype(out_dtype).itemsize
    w_bytes = (w1t.size * w1t.dtype.itemsize + w2t.size * w2t.dtype.itemsize
               + b1f.size * 4 + b2f.size * 4)

    def working_set(tn_):
        # x / out double buffers + resident weights + in-kernel intermediates
        # (bf16 x copy, f32 + bf16 h, f32 pre-cast out).
        x_bytes = 2 * tn_ * din * x_itemsize
        out_bytes = 2 * tn_ * dout * out_itemsize
        interm = tn_ * (din * 2 + h_dim * 6 + dout * 4)
        return x_bytes + out_bytes + w_bytes + interm

    # --- row-tile selection ---------------------------------------------------
    n_rounded = _round_up(max(n, 1), 8)
    tn = min(_round_up(block_rows, 8), n_rounded)
    # v7x megacore: keep >= 2 steps on the "parallel" axis so both TCs get work.
    if n_rounded >= 16 and pl.cdiv(n_rounded, tn) < 2:
        tn = _round_up(pl.cdiv(n_rounded, 2), 8)
    # Shrink until the working set fits a budget safe for v7x (64 MiB physical VMEM).
    TILE_BUDGET = 40 * 1024 * 1024
    while tn > 8 and working_set(tn) > TILE_BUDGET:
        tn = _round_up(tn // 2, 8)
    assert working_set(tn) <= TILE_BUDGET, (
        "Projector weights too large to stay VMEM-resident; these sizes would "
        "need K/N tiling of the weights.")

    n_pad = pl.cdiv(n, tn) * tn
    if n_pad != n:
        x2 = jnp.pad(x2, ((0, n_pad - n), (0, 0)))

    grid = (n_pad // tn,)

    # Bytes the kernel actually moves to/from HBM (x native dtype in, bf16 out).
    cost = pl.CostEstimate(
        flops=2 * n_pad * din * h_dim + 2 * n_pad * h_dim * dout,
        transcendentals=n_pad * h_dim,
        bytes_accessed=(n_pad * din * x_itemsize + w_bytes
                        + n_pad * dout * out_itemsize),
    )

    # Scoped VMEM: enough for the chosen tile (+ headroom), never above 48 MiB so
    # it stays well inside v7x's 64 MiB physical VMEM (trivially fine on v5e/v6e).
    vmem_limit = int(min(max(working_set(tn) + (8 << 20), 32 << 20), 48 << 20))

    def _resident_spec(shape):
        # Constant block index -> fetched once, stays resident across all steps.
        idx = lambda *_: (0,) * len(shape)
        try:
            return pl.BlockSpec(shape, idx, pipeline_mode=pl.Buffered(1))
        except Exception:  # older API without pipeline_mode: fall back to default
            return pl.BlockSpec(shape, idx)

    out = pl.pallas_call(
        projector_kernel,
        out_shape=jax.ShapeDtypeStruct((n_pad, dout), out_dtype),
        grid_spec=pltpu.PrefetchScalarGridSpec(
            num_scalar_prefetch=0,
            grid=grid,
            in_specs=[
                pl.BlockSpec((tn, din), lambda i: (i, 0)),   # new row tile per step
                _resident_spec((din, h_dim)),                # W1^T (bf16)
                _resident_spec((1, h_dim)),                  # b1   (f32)
                _resident_spec((h_dim, dout)),               # W2^T (bf16)
                _resident_spec((1, dout)),                   # b2   (f32)
            ],
            out_specs=pl.BlockSpec((tn, dout), lambda i: (i, 0)),
        ),
        compiler_params=pltpu.CompilerParams(
            dimension_semantics=("parallel",),   # independent row tiles -> megacore
            vmem_limit_bytes=vmem_limit,
        ),
        cost_estimate=cost,
    )(x2, w1t, b1f, w2t, b2f)

    if n_pad != n:
        out = out[:n]
    return out.reshape(lead_shape + (dout,))


def projector_reference(x, w1, b1, w2, b2, compute_dtype=jnp.bfloat16,
                        out_dtype=jnp.bfloat16):
    """Pure-JAX reference with the same autocast-style precision as the kernel."""
    din = x.shape[-1]
    dout = w2.shape[0]
    x2 = x.reshape(-1, din).astype(compute_dtype)
    h = lax.dot_general(x2, w1.astype(compute_dtype),
                        dimension_numbers=(((1,), (1,)), ((), ())),
                        preferred_element_type=jnp.float32)
    h = h + b1.astype(jnp.float32)
    h = h * jax.nn.sigmoid(h)
    out = lax.dot_general(h.astype(compute_dtype), w2.astype(compute_dtype),
                          dimension_numbers=(((1,), (1,)), ((), ())),
                          preferred_element_type=jnp.float32)
    out = out + b2.astype(jnp.float32)
    return out.reshape(x.shape[:-1] + (dout,)).astype(out_dtype)


if __name__ == "__main__":
    # Small shapes consistent with the module (real: Din=768, H=128, Dout=4096).
    B, S = 2, 128
    in_features, hidden_dim, out_features = 128, 32, 256

    key = jax.random.PRNGKey(0)
    kx, k1, k2, kb1, kb2 = jax.random.split(key, 5)

    x = jax.random.normal(kx, (B, S, in_features), dtype=jnp.float32)

    # Xavier-uniform weights (as in the module).  The module zero-inits biases;
    # small random biases are used so the bias-add path is actually exercised.
    lim1 = (6.0 / (in_features + hidden_dim)) ** 0.5
    lim2 = (6.0 / (hidden_dim + out_features)) ** 0.5
    w1 = jax.random.uniform(k1, (hidden_dim, in_features), jnp.float32, -lim1, lim1)
    w2 = jax.random.uniform(k2, (out_features, hidden_dim), jnp.float32, -lim2, lim2)
    b1 = 0.01 * jax.random.normal(kb1, (hidden_dim,), dtype=jnp.float32)
    b2 = 0.01 * jax.random.normal(kb2, (out_features,), dtype=jnp.float32)

    # One-time parameter prep (transpose + bf16 cast), reused across calls.
    w1t, b1f, w2t, b2f = prepare_projector_params(w1, b1, w2, b2)

    # block_rows=64 -> 4 grid steps at these shapes, exercising the row tiling.
    out = projector_forward(x, w1t, b1f, w2t, b2f, block_rows=64)
    out = jax.block_until_ready(out)

    ref = projector_reference(x, w1, b1, w2, b2)
    assert out.shape == (B, S, out_features)
    assert out.dtype == jnp.bfloat16
    assert jnp.allclose(out.astype(jnp.float32), ref.astype(jnp.float32),
                        atol=3e-2, rtol=3e-2), "mismatch vs reference"

    print("KERNEL_OK")
</pallas_src>

<mosaic_0001>
module attributes {stable_mosaic.version = 11 : i64} {
  func.func @projector_kernel(%arg0: i32, %arg1: memref<64x128xf32, #tpu.memory_space<vmem>>, %arg2: memref<128x32xbf16, #tpu.memory_space<vmem>>, %arg3: memref<1x32xf32, #tpu.memory_space<vmem>>, %arg4: memref<32x256xbf16, #tpu.memory_space<vmem>>, %arg5: memref<1x256xf32, #tpu.memory_space<vmem>>, %arg6: memref<64x256xbf16, #tpu.memory_space<vmem>>) attributes {dimension_semantics = [#tpu.dimension_semantics<parallel>], iteration_bounds = array<i64: 4>, scalar_prefetch = 0 : i64, scratch_operands = 0 : i64, tpu.core_type = #tpu.core_type<tc>, window_params = [{transform_indices = @transform_0, window_bounds = array<i64: 64, 128>}, {pipeline_mode = #tpu.pipeline_mode<synchronous>, transform_indices = @transform_1, window_bounds = array<i64: 128, 32>}, {pipeline_mode = #tpu.pipeline_mode<synchronous>, transform_indices = @transform_2, window_bounds = array<i64: 1, 32>}, {pipeline_mode = #tpu.pipeline_mode<synchronous>, transform_indices = @transform_3, window_bounds = array<i64: 32, 256>}, {pipeline_mode = #tpu.pipeline_mode<synchronous>, transform_indices = @transform_4, window_bounds = array<i64: 1, 256>}, {transform_indices = @transform_5, window_bounds = array<i64: 64, 256>}]} {
    %c0 = arith.constant 0 : index
    %c0_0 = arith.constant 0 : index
    %0 = vector.load %arg1[%c0, %c0_0] : memref<64x128xf32, #tpu.memory_space<vmem>>, vector<64x128xf32>
    %1 = arith.truncf %0 : vector<64x128xf32> to vector<64x128xbf16>
    %c0_1 = arith.constant 0 : index
    %c0_2 = arith.constant 0 : index
    %2 = vector.load %arg2[%c0_1, %c0_2] : memref<128x32xbf16, #tpu.memory_space<vmem>>, vector<128x32xbf16>
    %cst = arith.constant dense<0.000000e+00> : vector<64x32xf32>
    %3 = tpu.matmul %1, %2, %cst {dimension_numbers = #tpu.dot_dimension_numbers<[1], [0], [0], [1], [0, 0, 1, 1], [], []>} : vector<64x128xbf16>, vector<128x32xbf16>, vector<64x32xf32> -> vector<64x32xf32>
    %c0_3 = arith.constant 0 : index
    %c0_4 = arith.constant 0 : index
    %4 = vector.load %arg3[%c0_3, %c0_4] : memref<1x32xf32, #tpu.memory_space<vmem>>, vector<1x32xf32>
    %5 = vector.broadcast %4 : vector<1x32xf32> to vector<64x32xf32>
    %6 = arith.addf %3, %5 : vector<64x32xf32>
    %7 = arith.negf %6 : vector<64x32xf32>
    %8 = math.exp %7 : vector<64x32xf32>
    %cst_5 = arith.constant 1.000000e+00 : f32
    %9 = vector.broadcast %cst_5 : f32 to vector<64x32xf32>
    %10 = arith.addf %9, %8 : vector<64x32xf32>
    %11 = arith.divf %9, %10 : vector<64x32xf32>
    %12 = arith.mulf %6, %11 : vector<64x32xf32>
    %13 = arith.truncf %12 : vector<64x32xf32> to vector<64x32xbf16>
    %c0_6 = arith.constant 0 : index
    %c0_7 = arith.constant 0 : index
    %14 = vector.load %arg4[%c0_6, %c0_7] : memref<32x256xbf16, #tpu.memory_space<vmem>>, vector<32x256xbf16>
    %cst_8 = arith.constant dense<0.000000e+00> : vector<64x256xf32>
    %15 = tpu.matmul %13, %14, %cst_8 {dimension_numbers = #tpu.dot_dimension_numbers<[1], [0], [0], [1], [0, 0, 1, 1], [], []>} : vector<64x32xbf16>, vector<32x256xbf16>, vector<64x256xf32> -> vector<64x256xf32>
    %c0_9 = arith.constant 0 : index
    %c0_10 = arith.constant 0 : index
    %16 = vector.load %arg5[%c0_9, %c0_10] : memref<1x256xf32, #tpu.memory_space<vmem>>, vector<1x256xf32>
    %17 = vector.broadcast %16 : vector<1x256xf32> to vector<64x256xf32>
    %18 = arith.addf %15, %17 : vector<64x256xf32>
    %19 = arith.truncf %18 : vector<64x256xf32> to vector<64x256xbf16>
    %c0_11 = arith.constant 0 : index
    %c0_12 = arith.constant 0 : index
    %20 = vector.load %arg6[%c0_11, %c0_12] : memref<64x256xbf16, #tpu.memory_space<vmem>>, vector<64x256xbf16>
    tpu.vector_store %arg6[%c0_11, %c0_12], %19 {strides = array<i32>} : memref<64x256xbf16, #tpu.memory_space<vmem>>, vector<64x256xbf16>,
    return
  }
  func.func @transform_0(%arg0: i32) -> (i32, i32) {
    %c0_i32 = arith.constant 0 : i32
    %c0_i32_0 = arith.constant 0 : i32
    return %arg0, %c0_i32 : i32, i32
  }
  func.func @transform_1(%arg0: i32) -> (i32, i32) {
    %c0_i32 = arith.constant 0 : i32
    %c0_i32_0 = arith.constant 0 : i32
    %c0_i32_1 = arith.constant 0 : i32
    return %c0_i32, %c0_i32_0 : i32, i32
  }
  func.func @transform_2(%arg0: i32) -> (i32, i32) {
    %c0_i32 = arith.constant 0 : i32
    %c0_i32_0 = arith.constant 0 : i32
    %c0_i32_1 = arith.constant 0 : i32
    return %c0_i32, %c0_i32_0 : i32, i32
  }
  func.func @transform_3(%arg0: i32) -> (i32, i32) {
    %c0_i32 = arith.constant 0 : i32
    %c0_i32_0 = arith.constant 0 : i32
    %c0_i32_1 = arith.constant 0 : i32
    return %c0_i32, %c0_i32_0 : i32, i32
  }
  func.func @transform_4(%arg0: i32) -> (i32, i32) {
    %c0_i32 = arith.constant 0 : i32
    %c0_i32_0 = arith.constant 0 : i32
    %c0_i32_1 = arith.constant 0 : i32
    return %c0_i32, %c0_i32_0 : i32, i32
  }
  func.func @transform_5(%arg0: i32) -> (i32, i32) {
    %c0_i32 = arith.constant 0 : i32
    %c0_i32_0 = arith.constant 0 : i32
    return %arg0, %c0_i32 : i32, i32
  }
}

</mosaic_0001>

<bundles_post_ra>
// kernel: tpu_custom_call.1
= control target key start
LH: loop header
LB: loop body
LE: loop exit
PB: predicated region body
PF: predicated region fallthrough
CT: control target
= control target key end

     0   :  { %10 = vsyncpa [#allocation3], 0  ;;  %s1354_s0 = inlined_call_operand.hbm [shape: f32[256,128], index: 0, kind: input, shape index: {}]   ;;  %s1355_s1 = inlined_call_operand.vmem [shape: bf16[128,32], index: 1, kind: input, shape index: {}]   ;;  %s1356_s2 = inlined_call_operand.vmem [shape: f32[1,32], index: 2, kind: input, shape index: {}]   ;;  %s1357_s3 = inlined_call_operand.vmem [shape: bf16[32,256], index: 3, kind: input, shape index: {}]   ;;  %s1358_s4 = inlined_call_operand.vmem [shape: f32[1,256], index: 4, kind: input, shape index: {}]   ;;  %s1359_s5 = inlined_call_operand.hbm [shape: bf16[256,256], index: 5, kind: output, shape index: {}]  }
   0x1   :  { %12 = vsyncpa [#allocation3 + $0x1], 0 }
   0x2   :  { %13 = vsyncpa [#allocation4], 0 }
   0x3   :  { %15 = vsyncpa [#allocation4 + $0x1], 0  ;;  %s1045_s18 = smov 0   ;;  %s1047_s19 = smov 0  }
   0x4   :  { %s1049_s20 = smov 0   ;;  %s1051_s21 = smov 0  }
   0x5 LB: > { %s1066_s22 = sadd.s32 4294967295, %s1009_s21   ;;  %s728_s23 = sadd.s32 4294967294, %s1009_s21   ;;  %s1009_s21 = sphi %s1051_s21, %s1370_s21   ;;  %s1005_s20 = sphi %s1049_s20, %s1369_s20   ;;  %s1001_s19 = sphi %s1047_s19, %s1368_s19   ;;  %s997_s18 = sphi %s1045_s18, %s1367_s18  }
   0x6   : > { %s1070_s24 = sadd.s32 1, %s1009_s21   ;;  %s28_s25 = sadd.s32 1, %s1005_s20 }
   0x7   : > { %s25_s26 = ssub.s32 %s1009_s21, %s1070_s24  ;;  %p35_p0 = scmp.ne.s32.totalorder %s1005_s20, %s1001_s19 }
   0x8   : > { %p26_p1 = scmp.eq.s32.totalorder %s25_s26, 0  ;;  %p36_p2 = scmp.eq.s32.totalorder %s1009_s21, 0 }
   0x9   : > { %p41_p3 = scmp.ne.s32.totalorder %s1001_s19, %s997_s18  ;;  %p42_p4 = scmp.eq.s32.totalorder %s1066_s22, 0 }
   0xa   : > { %s1082_s27 = scalar_select %p26_p1, %s1005_s20, %s28_s25  }
   0xb   : > { %p1084_p5 = por %p36_p2, %p35_p0  ;;  %p1088_p6 = por %p42_p4, %p41_p3 }
   0xc   : > { %p149_p7 = scmp.eq.s32.totalorder %s1066_s22, 3  ;;  %p155_p8 = scmp.eq.s32.totalorder %s728_s23, 3 }
   0xd   : > { %p842_p9 = scmp.lt.s32.totalorder %s1009_s21, 4  ;;  %s187_s7 = sand.u32 1, %s1005_s20  }
   0xe   : > { %p1094_p10 = por %p149_p7, %p35_p0  ;;  %p1098_p11 = por %p155_p8, %p41_p3 }
   0xf   : > { %s807_s8 = sshll.u32 %s1009_s21, 6  ;;  %s731_s9 = sshll.u32 %s187_s7, 6 }
  0x10   : > { %s196_s12 = scalar_lea.hbm %s1354_s0, %s807_s8  ;;  %s191_s14 = scalar_lea.vmem [#allocation2], %s731_s9 }
  0x11   : > { %s197_s13 = sshll.u32 %s196_s12, 4  ;;  %s199_s15 = sshll.u32 %s191_s14, 4  ;;  %s198_s13 = int_to_ptr.hbm [resolvable:$true] %s197_s13  ;;  %s200_s15 = int_to_ptr.vmem [resolvable:$true] %s199_s15 }
  0x12   : > { %p1109_p12 = pnand %p842_p9, %p1084_p5  ;;  %p734_p13 = scmp.ge.s32.totalorder %s1009_s21, 1 }
  0x13   : > { %p207_p0 = scmp.lt.s32.totalorder %s1009_s21, 5  ;;  %s188_s17 = scalar_lea.sflag [#allocation3], %s187_s7 }
  0x14   : > { %s913_s23 = sshra.s32 %s198_s13, 4  ;;  %p917_p2 = pneg %p1109_p12  ;;  %s914_s23 = int_to_ptr.hbm [resolvable:$true] %s913_s23 }
  0x15   : > { %s915_s25 = scalar_lea.hbm %s914_s23, 64  ;;  %s920_s28 = scalar_lea.hbm %s1354_s0, 256 }
  0x16   : > { %p916_p1 = scmp.ne.s32.totalorder %s914_s23, %s915_s25  ;;  %p921_p5 = scmp.lt.s32.totalorder %s914_s23, %s1354_s0 }
  0x17   : > { %p922_p7 = scmp.lt.s32.totalorder %s920_s28, %s915_s25 }
  0x18   : > { %p918_p3 = pnand %p917_p2, %p916_p1 }
  0x19   : > { %p923_p8 = por %p922_p7, %p921_p5 }
  0x1a   : > { %p919_p4 = pneg %p918_p3 }
  0x1c   : > { %p924_p9 = pnand %p923_p8, %p919_p4 }
  0x1e   : > { %927 = shalt.err (!%p924_p9)
}
  0x1f   : > { %s1011_s7 = smov 128   ;;  %s1012_s11 = smov 8  }
  0x20   : > { %837 = dma.hbm_to_vmem [thread:$0]  (!%p1109_p12), %s198_s13, 1024, %s200_s15, %s188_s17, %s1011_s7, %s1011_s7, %s1012_s11  }
  0x21   : > { %p208_p1 = pnand %p734_p13, %p207_p0 }
  0x22   : > { %s1130_s12 = sand.u32 (!%p208_p1), 1, %s1001_s19  }
  0x23   : > { %211 = sbr.rel (%p208_p1) target bundleno = 437 (0x1b5), region = 40  ;;  %s735_s14 = sshll.u32 (!%p208_p1), %s1130_s12, 6 }
  0x24   : > { %s214_s23 = scalar_lea.sflag (!%p208_p1), [#allocation3], %s1130_s12  ;;  %s1136_s25 = scalar_lea.vmem (!%p208_p1), [#allocation2], %s735_s14 }
  0x28   : > { %988 = dma.done.wait (%p1088_p6), %s214_s23, 1024  }
  0x29   : > { %990 = vsyncadd (%p1088_p6), %s214_s23, 4294966272  ;;  %v815_v0 = vld [vmem:[%s1355_s1 + $0x38] sm:$0xff]  ;;  %v814_v1 = vld [vmem:[%s1355_s1 + $0x30] sm:$0xff]  ;;  %vm551_vm8 = vcmask 261120   ;;  %s639_s15 = scalar_lea.sflag [#allocation4], %s1130_s12  ;;  %s963_s8 = scalar_lea.hbm %s1359_s5, 256 }
  0x2a   : > { %328 = vmatpush.bf16.msra.mxu0 %v815_v0  ;;  %822 = vmatpush.bf16.msra.mxu3 %v815_v0  ;;  %v813_v2 = vld [vmem:[%s1355_s1 + $0x28] sm:$0xff]  ;;  %v812_v3 = vld [vmem:[%s1355_s1 + $0x20] sm:$0xff]  ;;  %v811_v4 = vld [vmem:[%s1355_s1 + $0x18] sm:$0xff] }
  0x2b   : > { %v810_v5 = vld [vmem:[%s1355_s1 + $0x10] sm:$0xff]  ;;  %v809_v6 = vld [vmem:[%s1355_s1 + $0x8] sm:$0xff]  ;;  %v808_v7 = vld [vmem:[%s1355_s1] sm:$0xff] }
  0x2c   : > { %v248_v8 = vld [vmem:[%s1136_s25] sm:$0xff]  ;;  %v249_v9 = vld [vmem:[%s1136_s25 + $0x8] sm:$0xff]  ;;  %v250_v10 = vld [vmem:[%s1136_s25 + $0x10] sm:$0xff] }
  0x2d   : > { %v251_v11 = vld [vmem:[%s1136_s25 + $0x18] sm:$0xff]  ;;  %v256_v12 = vpack.c.bf16 %v249_v9, %v248_v8  ;;  %v252_v14 = vld [vmem:[%s1136_s25 + $0x20] sm:$0xff]  ;;  %v253_v15 = vld [vmem:[%s1136_s25 + $0x28] sm:$0xff] }
  0x2e   : > { %329 = vmatpush.bf16.msra.mxu0 %v814_v1  ;;  %823 = vmatpush.bf16.msra.mxu3 %v814_v1  ;;  %v257_v13 = vpack.c.bf16 %v251_v11, %v250_v10  ;;  %v258_v16 = vpack.c.bf16 %v253_v15, %v252_v14  ;;  %v254_v17 = vld [vmem:[%s1136_s25 + $0x30] sm:$0xff]  ;;  %v255_v18 = vld [vmem:[%s1136_s25 + $0x38] sm:$0xff]  ;;  %v1177_v20 = vld [vmem:[%s1356_s2] ss:$0 sm:$0xff]  ;;  %s1311_s25 = scalar_lea.vmem [#allocation5], %s735_s14  ;;  %s821_s14 = sshll.u32 %s1066_s22, 6 }
  0x2f   : > { %v259_v19 = vpack.c.bf16 %v255_v18, %v254_v17  ;;  %v787_v24 = vld [vmem:[%s1357_s3 + $0x10] sm:$0xf]  ;;  %v819_v25 = vld [vmem:[%s1357_s3 + $0x14] sm:$0xf0]  ;;  %v818_v27 = vld [vmem:[%s1357_s3 + $0x14] sm:$0xf]  ;;  %s651_s11 = scalar_lea.hbm %s1359_s5, %s821_s14 }
  0x30   : > { %v788_v26 = vor.u32 %v819_v25, %v787_v24  ;;  %v789_v28 = vld [vmem:[%s1357_s3 + $0x18] sm:$0xf0]  ;;  %v779_v32 = vld [vmem:[%s1357_s3] sm:$0xf]  ;;  %v817_v33 = vld [vmem:[%s1357_s3 + $0x4] sm:$0xf0] }
  0x31   : > { %v792_v29 = vor.u32 %v818_v27, %v789_v28  ;;  %v816_v34 = vld [vmem:[%s1357_s3 + $0x4] sm:$0xf]  ;;  %v780_v36 = vor.u32 %v817_v33, %v779_v32  ;;  %v781_v37 = vld [vmem:[%s1357_s3 + $0x8] sm:$0xf0]  ;;  %s652_s23 = sshll.u32 %s1311_s25, 4  ;;  %s654_s13 = sshll.u32 %s651_s11, 4  ;;  %s653_s23 = int_to_ptr.vmem [resolvable:$true] %s652_s23  ;;  %s655_s13 = int_to_ptr.hbm [resolvable:$true] %s654_s13 }
  0x32   : > { %330 = vmatpush.bf16.msra.mxu0 %v813_v2  ;;  %824 = vmatpush.bf16.msra.mxu3 %v813_v2  ;;  %v784_v40 = vor.u32 %v816_v34, %v781_v37  ;;  %s957_s16 = sshra.s32 %s655_s13, 4  ;;  %s958_s16 = int_to_ptr.hbm [resolvable:$true] %s957_s16 }
  0x33   : > { %570 = vmatpush.bf16.msra.mxu1 %v788_v26  ;;  %599 = vmatpush.bf16.msra.mxu2 %v792_v29  ;;  %s959_s22 = scalar_lea.hbm %s958_s16, 64  ;;  %p964_p0 = scmp.lt.s32.totalorder %s958_s16, %s1359_s5 }
  0x34   : > { %p960_p6 = scmp.ne.s32.totalorder %s958_s16, %s959_s22  ;;  %p965_p2 = scmp.lt.s32.totalorder %s963_s8, %s959_s22 }
  0x36   : > { %331 = vmatpush.bf16.msra.mxu0 %v812_v3  ;;  %825 = vmatpush.bf16.msra.mxu3 %v812_v3  ;;  %p961_p12 = pnand %p960_p6, %p1094_p10  ;;  %p966_p3 = por %p965_p2, %p964_p0 }
  0x37   : > { %571 = vmatpush.bf16.msra.mxu1 %v780_v36  ;;  %600 = vmatpush.bf16.msra.mxu2 %v784_v40 }
  0x38   : > { %p962_p13 = pneg %p961_p12 }
  0x3a   : > { %332 = vmatpush.bf16.msra.mxu0 %v811_v4  ;;  %826 = vmatpush.bf16.msra.mxu3 %v811_v4  ;;  %p967_p4 = pnand %p966_p3, %p962_p13 }
  0x3e   : > { %333 = vmatpush.bf16.msra.mxu0 %v810_v5  ;;  %827 = vmatpush.bf16.msra.mxu3 %v810_v5 }
  0x42   : > { %334 = vmatpush.bf16.msra.mxu0 %v809_v6  ;;  %828 = vmatpush.bf16.msra.mxu3 %v809_v6 }
  0x46   : > { %335 = vmatpush.bf16.msra.mxu0 %v808_v7  ;;  %829 = vmatpush.bf16.msra.mxu3 %v808_v7 }
  0x49   : > { %336 = vmatmul.bf16.vlgmr.msra.gmra.mxu0 %v256_v12  ;;  %341 = vmatmul.bf16.vlgmr.msra.gmra.mxu3 %v257_v13 }
  0x59   : > { %346 = vmatmul.bf16.gmra.mxu3 %v258_v16 }
  0x69   : > { %351 = vmatmul.bf16.gmra.mxu3 %v259_v19 }
  0xc6   : > { %v337_v21 = vpop.f32.mrf.mxu0 }
  0xc7   : > { %v1180_v22 = vadd.f32 %v1177_v20, %v337_v21 }
  0xc9   : > { %v769_v23 = vmul.f32 -1.442695, %v1180_v22 }
  0xcb   : > { %881 = vpow2.f32 %v769_v23 }
  0xcc   : > { %v342_v30 = vpop.f32.mrf.mxu3 }
  0xcd   : > { %v1196_v31 = vadd.f32 %v1177_v20, %v342_v30 }
  0xce   : > { %v339_v35 = vpop.f32.mrf.mxu0 }
  0xcf   : > { %v771_v38 = vmul.f32 -1.442695, %v1196_v31  ;;  %v1212_v39 = vadd.f32 %v1177_v20, %v339_v35 }
  0xd1   : > { %v882_v41 = vpop.eup %881  ;;  %v770_v42 = vmul.f32 -1.442695, %v1212_v39  ;;  %883 = vpow2.f32 %v771_v38 }
  0xd2   : > { %v381_v43 = vadd.f32 1.0, %v882_v41 }
  0xd3   : > { %885 = vpow2.f32 %v770_v42 }
  0xd4   : > { %887 = vrcp.f32 %v381_v43  ;;  %v344_v44 = vpop.f32.mrf.mxu3  ;;  %v400_v1 = vand.u32 2147483648, %v381_v43  ;;  %vm394_vm1 = vweird.f32 %v381_v43  ;;  %v398_v3 = vand.u32 2147483647, %v381_v43 }
  0xd5   : > { %v1216_v45 = vadd.f32 %v1177_v20, %v344_v44 }
  0xd6   : > { %v401_v14 = vor.u32 1.1754944e-38, %v400_v1  ;;  %vm399_vm4 = vcmp.eq.f32.partialorder %v398_v3, 8.507059e+37 }
  0xd7   : > { %v772_v46 = vmul.f32 -1.442695, %v1216_v45  ;;  %v884_v47 = vpop.eup %883 }
  0xd8   : > { %v1219_v51 = vadd.f32 1.0, %v884_v47 }
  0xd9   : > { %v886_v48 = vpop.eup %885  ;;  %889 = vpow2.f32 %v772_v46 }
  0xda   : > { %v888_v49 = vpop.eup %887  ;;  %v382_v52 = vadd.f32 1.0, %v886_v48  ;;  %vm424_vm10 = vweird.f32 %v1219_v51  ;;  %v430_v42 = vand.u32 2147483648, %v1219_v51  ;;  %v428_v44 = vand.u32 2147483647, %v1219_v51 }
  0xdb   : > { %v390_v50 = vmul.f32 %v888_v49, %v381_v43  ;;  %vm395_vm0 = vweird.f32 %v888_v49 }
  0xdc   : > { %v347_v53 = vpop.f32.mrf.mxu3  ;;  %891 = vrcp.f32 %v382_v52  ;;  %vm1234_vm2 = vmor %vm394_vm1, %vm395_vm0  ;;  %v413_v6 = vand.u32 2147483647, %v382_v52  ;;  %v415_v7 = vand.u32 2147483648, %v382_v52  ;;  %vm409_vm5 = vweird.f32 %v382_v52 }
  0xdd   : > { %v391_v54 = vsub.f32 1.0, %v390_v50  ;;  %v1222_v55 = vadd.f32 %v1177_v20, %v347_v53  ;;  %893 = vrcp.f32 %v1219_v51  ;;  %vm429_vm0 = vcmp.eq.f32.partialorder %v428_v44, 8.507059e+37 }
  0xde   : > { %v416_v18 = vor.u32 1.1754944e-38, %v415_v7  ;;  %vm414_vm7 = vcmp.eq.f32.partialorder %v413_v6, 8.507059e+37 }
  0xdf   : > { %v890_v56 = vpop.eup %889  ;;  %v392_v57 = vmul.f32 %v888_v49, %v391_v54  ;;  %v773_v59 = vmul.f32 -1.442695, %v1222_v55  ;;  %v431_v54 = vor.u32 1.1754944e-38, %v430_v42 }
  0xe0   : > { %v1225_v58 = vadd.f32 1.0, %v890_v56 }
  0xe1   : > { %v393_v61 = vadd.f32 %v888_v49, %v392_v57 }
  0xe2   : > { %895 = vrcp.f32 %v1225_v58  ;;  %v892_v60 = vpop.eup %891  ;;  %vm439_vm12 = vweird.f32 %v1225_v58 }
  0xe3   : > { %897 = vpow2.f32 %v773_v59  ;;  %v405_v62 = vmul.f32 %v892_v60, %v382_v52  ;;  %v1229_v0 = vpop.eup %893  ;;  %v397_v10 = vsel %vm1234_vm2, %v888_v49, %v393_v61  ;;  %vm410_vm3 = vweird.f32 %v892_v60 }
  0xe4   : > { %v349_v63 = vpop.f32.mrf.mxu3  ;;  %v420_v11 = vmul.f32 %v1229_v0, %v1219_v51  ;;  %v402_v17 = vsel %vm399_vm4, %v401_v14, %v397_v10  ;;  %vm411_vm6 = vmor %vm409_vm5, %vm410_vm3  ;;  %vm425_vm11 = vweird.f32 %v1229_v0 }
  0xe5   : > { %v1232_v2 = vadd.f32 %v1177_v20, %v349_v63  ;;  %v406_v4 = vsub.f32 1.0, %v405_v62  ;;  %v509_v28 = vmul.f32 %v402_v17, %v1180_v22  ;;  %v445_v22 = vand.u32 2147483648, %v1225_v58  ;;  %vm426_vm14 = vmor %vm424_vm10, %vm425_vm11 }
  0xe6   : > { %v421_v23 = vsub.f32 1.0, %v420_v11 }
  0xe7   : > { %v774_v8 = vmul.f32 -1.442695, %v1232_v2  ;;  %v407_v12 = vmul.f32 %v892_v60, %v406_v4  ;;  %v446_v48 = vor.u32 1.1754944e-38, %v445_v22 }
  0xe8   : > { %v1239_v9 = vpop.eup %895  ;;  %v422_v34 = vmul.f32 %v1229_v0, %v421_v23 }
  0xe9   : > { %v898_v13 = vpop.eup %897  ;;  %v435_v15 = vmul.f32 %v1239_v9, %v1225_v58  ;;  %899 = vpow2.f32 %v774_v8  ;;  %v408_v16 = vadd.f32 %v892_v60, %v407_v12  ;;  %vm440_vm9 = vweird.f32 %v1239_v9 }
  0xea   : > { %v1247_v21 = vadd.f32 1.0, %v898_v13  ;;  %v423_v38 = vadd.f32 %v1229_v0, %v422_v34  ;;  %vm441_vm13 = vmor %vm439_vm12, %vm440_vm9 }
  0xeb   : > { %v436_v19 = vsub.f32 1.0, %v435_v15  ;;  %v412_v24 = vsel %vm411_vm6, %v892_v60, %v408_v16 }
  0xec   : > { %v352_v25 = vpop.f32.mrf.mxu3  ;;  %v417_v26 = vsel %vm414_vm7, %v416_v18, %v412_v24  ;;  %901 = vrcp.f32 %v1247_v21  ;;  %v427_v52 = vsel %vm426_vm14, %v1229_v0, %v423_v38  ;;  %vm454_vm2 = vweird.f32 %v1247_v21 }
  0xed   : > { %v1250_v27 = vadd.f32 %v1177_v20, %v352_v25  ;;  %v510_v29 = vmul.f32 %v417_v26, %v1212_v39  ;;  %v437_v30 = vmul.f32 %v1239_v9, %v436_v19  ;;  %v443_v39 = vand.u32 2147483647, %v1225_v58 }
  0xee   : > { %v432_v51 = vsel %vm429_vm0, %v431_v54, %v427_v52  ;;  %v460_v7 = vand.u32 2147483648, %v1247_v21  ;;  %v458_v8 = vand.u32 2147483647, %v1247_v21 }
  0xef   : > { %v900_v32 = vpop.eup %899  ;;  %v775_v33 = vmul.f32 -1.442695, %v1250_v27  ;;  %v517_v36 = vpack.c.bf16 %v510_v29, %v509_v28  ;;  %v438_v37 = vadd.f32 %v1239_v9, %v437_v30  ;;  %vm444_vm15 = vcmp.eq.f32.partialorder %v443_v39, 8.507059e+37 }
  0xf0   : > { %v1258_v35 = vadd.f32 1.0, %v900_v32  ;;  %v511_v61 = vmul.f32 %v432_v51, %v1196_v31  ;;  %v461_v14 = vor.u32 1.1754944e-38, %v460_v7  ;;  %vm459_vm9 = vcmp.eq.f32.partialorder %v458_v8, 8.507059e+37 }
  0xf1   : > { %903 = vpow2.f32 %v775_v33  ;;  %793 = vmatmul.msk.bf16.vlgmr.msra.gmra.mxu1 %vm551_vm8, %v517_v36  ;;  %797 = vmatmul.msk.bf16.vlgmr.msra.gmra.mxu2 %vm551_vm8, %v517_v36  ;;  %v442_v46 = vsel %vm441_vm13, %v1239_v9, %v438_v37 }
  0xf2   : > { %905 = vrcp.f32 %v1258_v35  ;;  %v902_v41 = vpop.eup %901  ;;  %v447_v56 = vsel %vm444_vm15, %v446_v48, %v442_v46  ;;  %vm469_vm4 = vweird.f32 %v1258_v35  ;;  %v473_v31 = vand.u32 2147483647, %v1258_v35 }
  0xf3   : > { %v450_v53 = vmul.f32 %v902_v41, %v1247_v21  ;;  %v512_v59 = vmul.f32 %v447_v56, %v1216_v45  ;;  %v475_v45 = vand.u32 2147483648, %v1258_v35  ;;  %vm455_vm3 = vweird.f32 %v902_v41 }
  0xf4   : > { %v354_v40 = vpop.f32.mrf.mxu3  ;;  %vm456_vm6 = vmor %vm454_vm2, %vm455_vm3  ;;  %vm474_vm7 = vcmp.eq.f32.partialorder %v473_v31, 8.507059e+37 }
  0xf5   : > { %v1273_v43 = vadd.f32 %v1177_v20, %v354_v40  ;;  %v451_v60 = vsub.f32 1.0, %v450_v53  ;;  %v518_v3 = vpack.c.bf16 %v512_v59, %v511_v61  ;;  %v476_v10 = vor.u32 1.1754944e-38, %v475_v45 }
  0xf7   : > { %v904_v47 = vpop.eup %903  ;;  %v776_v49 = vmul.f32 -1.442695, %v1273_v43  ;;  %v452_v0 = vmul.f32 %v902_v41, %v451_v60 }
  0xf8   : > { %v906_v50 = vpop.eup %905  ;;  %v1281_v58 = vadd.f32 1.0, %v904_v47 }
  0xf9   : > { %v465_v20 = vmul.f32 %v906_v50, %v1258_v35  ;;  %907 = vpow2.f32 %v776_v49  ;;  %vm470_vm1 = vweird.f32 %v906_v50  ;;  %v453_v5 = vadd.f32 %v902_v41, %v452_v0 }
  0xfa   : > { %909 = vrcp.f32 %v1281_v58  ;;  %vm471_vm5 = vmor %vm469_vm4, %vm470_vm1  ;;  %vm484_vm11 = vweird.f32 %v1281_v58 }
  0xfb   : > { %v466_v57 = vsub.f32 1.0, %v465_v20  ;;  %v457_v12 = vsel %vm456_vm6, %v902_v41, %v453_v5  ;;  %v525_v41 = vld [vmem:[%s1358_s4] sm:$0x3] }
  0xfc   : > { %v462_v17 = vsel %vm459_vm9, %v461_v14, %v457_v12  ;;  %v527_v44 = vperm.slane %v525_v41, 0  ;;  %v528_v46 = vperm.slane %v525_v41, 1 }
  0xfd   : > { %v467_v62 = vmul.f32 %v906_v50, %v466_v57  ;;  %v513_v24 = vmul.f32 %v462_v17, %v1222_v55  ;;  %v488_v55 = vand.u32 2147483647, %v1281_v58 }
  0xff   : > { %v908_v63 = vpop.eup %907  ;;  %v468_v4 = vadd.f32 %v906_v50, %v467_v62  ;;  %vm489_vm1 = vcmp.eq.f32.partialorder %v488_v55, 8.507059e+37 }
 0x100   : > { %v388_v1 = vadd.f32 1.0, %v908_v63  ;;  %v910_v6 = vpop.eup %909 }
 0x101   : > { %794 = vmatmul.msk.bf16.gmra.mxu1 %vm551_vm8, %v518_v3  ;;  %798 = vmatmul.msk.bf16.gmra.mxu2 %vm551_vm8, %v518_v3  ;;  %v472_v9 = vsel %vm471_vm5, %v906_v50, %v468_v4  ;;  %v480_v13 = vmul.f32 %v910_v6, %v1281_v58  ;;  %vm485_vm12 = vweird.f32 %v910_v6 }
 0x102   : > { %911 = vrcp.f32 %v388_v1  ;;  %v477_v15 = vsel %vm474_vm7, %v476_v10, %v472_v9  ;;  %v505_v29 = vand.u32 2147483648, %v388_v1  ;;  %vm499_vm13 = vweird.f32 %v388_v1  ;;  %vm486_vm15 = vmor %vm484_vm11, %vm485_vm12 }
 0x103   : > { %v514_v19 = vmul.f32 %v477_v15, %v1232_v2  ;;  %v481_v23 = vsub.f32 1.0, %v480_v13  ;;  %v503_v32 = vand.u32 2147483647, %v388_v1  ;;  %v490_v2 = vand.u32 2147483648, %v1281_v58 }
 0x104   : > { %v506_v34 = vor.u32 1.1754944e-38, %v505_v29 }
 0x105   : > { %v482_v25 = vmul.f32 %v910_v6, %v481_v23  ;;  %v519_v26 = vpack.c.bf16 %v514_v19, %v513_v24  ;;  %vm504_vm0 = vcmp.eq.f32.partialorder %v503_v32, 8.507059e+37  ;;  %v491_v36 = vor.u32 1.1754944e-38, %v490_v2 }
 0x107   : > { %v483_v30 = vadd.f32 %v910_v6, %v482_v25 }
 0x108   : > { %v912_v11 = vpop.eup %911 }
 0x109   : > { %v495_v16 = vmul.f32 %v912_v11, %v388_v1  ;;  %vm500_vm10 = vweird.f32 %v912_v11  ;;  %v487_v35 = vsel %vm486_vm15, %v910_v6, %v483_v30 }
 0x10a   : > { %vm501_vm14 = vmor %vm499_vm13, %vm500_vm10  ;;  %v492_v22 = vsel %vm489_vm1, %v491_v36, %v487_v35 }
 0x10b   : > { %v496_v18 = vsub.f32 1.0, %v495_v16  ;;  %v515_v39 = vmul.f32 %v492_v22, %v1250_v27 }
 0x10d   : > { %v497_v21 = vmul.f32 %v912_v11, %v496_v18 }
 0x10f   : > { %v498_v28 = vadd.f32 %v912_v11, %v497_v21 }
 0x111   : > { %795 = vmatmul.msk.bf16.gmra.mxu1 %vm551_vm8, %v519_v26  ;;  %799 = vmatmul.msk.bf16.gmra.mxu2 %vm551_vm8, %v519_v26  ;;  %v502_v33 = vsel %vm501_vm14, %v912_v11, %v498_v28 }
 0x112   : > { %v507_v37 = vsel %vm504_vm0, %v506_v34, %v502_v33 }
 0x113   : > { %v516_v38 = vmul.f32 %v507_v37, %v1273_v43 }
 0x115   : > { %v520_v40 = vpack.c.bf16 %v516_v38, %v515_v39 }
 0x121   : > { %796 = vmatmul.msk.bf16.gmra.mxu1 %vm551_vm8, %v520_v40  ;;  %800 = vmatmul.msk.bf16.gmra.mxu2 %vm551_vm8, %v520_v40 }
 0x16e   : > { %v573_v42 = vpop.f32.mrf.mxu1 }
 0x16f   : > { %v574_v48 = vadd.f32 %v573_v42, %v527_v44 }
 0x174   : > { %v602_v47 = vpop.f32.mrf.mxu2 }
 0x175   : > { %v603_v49 = vadd.f32 %v602_v47, %v528_v46 }
 0x176   : > { %v575_v50 = vpop.f32.mrf.mxu1 }
 0x177   : > { %v622_v52 = vpack.c.bf16 %v603_v49, %v574_v48  ;;  %v576_v43 = vadd.f32 %v575_v50, %v527_v44 }
 0x179   : > { %630 = vst [vmem:[%s1311_s25] sm:$0xff] %v622_v52 }
 0x17c   : > { %v604_v27 = vpop.f32.mrf.mxu2 }
 0x17d   : > { %v605_v53 = vadd.f32 %v604_v27, %v528_v46 }
 0x17e   : > { %v578_v54 = vpop.f32.mrf.mxu1 }
 0x17f   : > { %v623_v56 = vpack.c.bf16 %v605_v53, %v576_v43  ;;  %v579_v51 = vadd.f32 %v578_v54, %v527_v44 }
 0x181   : > { %631 = vst [vmem:[%s1311_s25 + $0x8] sm:$0xff] %v623_v56 }
 0x184   : > { %v607_v20 = vpop.f32.mrf.mxu2 }
 0x185   : > { %v608_v57 = vadd.f32 %v607_v20, %v528_v46 }
 0x186   : > { %v580_v58 = vpop.f32.mrf.mxu1 }
 0x187   : > { %v624_v59 = vpack.c.bf16 %v608_v57, %v579_v51  ;;  %v581_v61 = vadd.f32 %v580_v58, %v527_v44 }
 0x189   : > { %632 = vst [vmem:[%s1311_s25 + $0x10] sm:$0xff] %v624_v59 }
 0x18c   : > { %v609_v60 = vpop.f32.mrf.mxu2 }
 0x18d   : > { %v610_v62 = vadd.f32 %v609_v60, %v528_v46 }
 0x18e   : > { %v583_v63 = vpop.f32.mrf.mxu1 }
 0x18f   : > { %v625_v0 = vpack.c.bf16 %v610_v62, %v581_v61  ;;  %v584_v3 = vadd.f32 %v583_v63, %v527_v44 }
 0x191   : > { %633 = vst [vmem:[%s1311_s25 + $0x18] sm:$0xff] %v625_v0 }
 0x194   : > { %v612_v1 = vpop.f32.mrf.mxu2 }
 0x195   : > { %v613_v4 = vadd.f32 %v612_v1, %v528_v46 }
 0x196   : > { %v585_v45 = vpop.f32.mrf.mxu1 }
 0x197   : > { %v626_v5 = vpack.c.bf16 %v613_v4, %v584_v3  ;;  %v586_v6 = vadd.f32 %v585_v45, %v527_v44 }
 0x199   : > { %634 = vst [vmem:[%s1311_s25 + $0x20] sm:$0xff] %v626_v5 }
 0x19c   : > { %v614_v31 = vpop.f32.mrf.mxu2 }
 0x19d   : > { %v615_v7 = vadd.f32 %v614_v31, %v528_v46 }
 0x19e   : > { %v588_v9 = vpop.f32.mrf.mxu1 }
 0x19f   : > { %v627_v8 = vpack.c.bf16 %v615_v7, %v586_v6  ;;  %v589_v11 = vadd.f32 %v588_v9, %v527_v44 }
 0x1a1   : > { %635 = vst [vmem:[%s1311_s25 + $0x28] sm:$0xff] %v627_v8 }
 0x1a4   : > { %v617_v10 = vpop.f32.mrf.mxu2 }
 0x1a5   : > { %v618_v12 = vadd.f32 %v617_v10, %v528_v46 }
 0x1a6   : > { %v590_v14 = vpop.f32.mrf.mxu1 }
 0x1a7   : > { %v628_v13 = vpack.c.bf16 %v618_v12, %v589_v11  ;;  %v591_v16 = vadd.f32 %v590_v14, %v527_v44 }
 0x1a9   : > { %636 = vst [vmem:[%s1311_s25 + $0x30] sm:$0xff] %v628_v13 }
 0x1ac   : > { %v619_v15 = vpop.f32.mrf.mxu2 }
 0x1ad   : > { %v620_v17 = vadd.f32 %v619_v15, %v528_v46 }
 0x1af   : > { %v629_v18 = vpack.c.bf16 %v620_v17, %v591_v16 }
 0x1b1   : > { %637 = vst [vmem:[%s1311_s25 + $0x38] sm:$0xff] %v629_v18 }
 0x1b2   : > { %970 = shalt.err (!%p967_p4)
}
 0x1b3   : > { %s1013_s12 = smov 128   ;;  %s1014_s9 = smov 8  }
 0x1b4   : > { %832 = dma.vmem_to_hbm [thread:$0]  (%p1094_p10), %s653_s23, 1024, %s655_s13, %s639_s15, %s1013_s12, %s1013_s12, %s1014_s9  }
 0x1b5 PF: > { %p843_p5 = scmp.ge.s32.totalorder %s1009_s21, 2  ;;  %s669_s25 = sand.u32 1, %s997_s18  }
 0x1b6   : > { %s670_s14 = scalar_lea.sflag [#allocation4], %s669_s25 }
 0x1b7   : > { %p839_p7 = pnand %p843_p5, %p1098_p11 }
 0x1b9   : > { %p840_p8 = pneg %p839_p7 }
 0x1bb   : > { %992 = dma.done.wait (%p840_p8), %s670_s14, 1024  }
 0x1bc   : > { %994 = vsyncadd (%p840_p8), %s670_s14, 4294966272  ;;  %p18_p9 = scmp.ge.s32.totalorder %s1070_s24, 6   ;;  %s1367_s18 = smov %s1001_s19 }
 0x1bd   : > { %s1368_s19 = smov %s1005_s20  ;;  %s1369_s20 = smov %s1082_s27 }
 0x1be   : > { %s1370_s21 = smov %s1070_s24  ;;  %20 = sbr.rel (!%p18_p9) target bundleno = 5 (0x5), region = 85 }
 0x1c3   :  { %676 = vsyncpa [#allocation3], 1 }
 0x1c4   :  { %678 = vsyncpa [#allocation3 + $0x1], 1 }
 0x1c5   :  { %679 = vsyncpa [#allocation4], 1 }
 0x1c6   :  { %681 = vsyncpa [#allocation4 + $0x1], 1 }

</bundles_post_ra>
